<compile_context>
chip_gen: v6e
topology: v6e:2x2x1
jax: 0.10.0
libtpu: 0.0.40
codegen_flags: <defaults>
</compile_context>

<pallas_src>
import jax
import jax.numpy as jnp
from jax.experimental import pallas as pl
from jax.experimental.pallas import tpu as pltpu


def _round_up(x, m):
    return ((x + m - 1) // m) * m


def _physical_vmem_bytes():
    """Per-core VMEM capacity (128 MiB on v5e/v6e, 64 MiB on v7x)."""
    try:
        return int(pltpu.get_tpu_info().vmem_capacity_bytes)
    except Exception:
        return 64 * 1024 * 1024  # conservative fallback (v7x per-core)


# ---------------------------------------------------------------------------
# Kernel 1: small tables — table resident in VMEM, scalar row-copy gather.
# ---------------------------------------------------------------------------
def _vmem_row_gather_kernel(idx_ref, table_ref, out_ref):
    # idx_ref:   (n_padded,)               int32, SMEM (scalar prefetch)
    # table_ref: (num_location, emb_dim_p) f32,  VMEM, resident across steps
    # out_ref:   (block_rows, emb_dim_p)   f32,  output tile
    block_rows = out_ref.shape[0]
    base = pl.program_id(0) * block_rows

    def copy_row(r, carry):
        row = idx_ref[base + r]
        out_ref[pl.ds(r, 1), :] = table_ref[pl.ds(row, 1), :]
        return carry

    jax.lax.fori_loop(0, block_rows, copy_row, 0)


# ---------------------------------------------------------------------------
# Kernel 2: large tables — table stays in HBM, per-row DMA gather into the
# output tile (mem-bound at the useful N*D bytes, no resident-table limit).
# ---------------------------------------------------------------------------
def _hbm_row_gather_kernel(idx_ref, table_hbm, out_ref, copy_sem):
    # idx_ref:   (n_padded,)               int32, SMEM (scalar prefetch)
    # table_hbm: (num_location, emb_dim_p) f32,  memory_space=pl.ANY (HBM)
    # out_ref:   (block_rows, emb_dim_p)   f32,  output tile (VMEM)
    # copy_sem:  scalar DMA semaphore shared by all row copies of this tile
    block_rows = out_ref.shape[0]
    base = pl.program_id(0) * block_rows

    def issue(r, carry):
        row = idx_ref[base + r]
        pltpu.make_async_copy(
            table_hbm.at[pl.ds(row, 1), :],
            out_ref.at[pl.ds(r, 1), :],
            copy_sem,
        ).start()
        return carry

    jax.lax.fori_loop(0, block_rows, issue, 0)

    # All copies signal the same semaphore with identical sizes, so waiting
    # block_rows times (placeholder source row 0 — only the shape matters for
    # the wait amount) guarantees every row has landed before the pipeline
    # writes this output tile back to HBM.
    def drain(r, carry):
        pltpu.make_async_copy(
            table_hbm.at[pl.ds(0, 1), :],
            out_ref.at[pl.ds(r, 1), :],
            copy_sem,
        ).wait()
        return carry

    jax.lax.fori_loop(0, block_rows, drain, 0)


def user_embedding_db_forward(user_fea, embedding_table, *, block_rows=256,
                              force_hbm_gather=False):
    """Pallas equivalent of UserEmbeddingDB.forward.

    user_fea:        [num_samples, num_user_fea] integer features
    embedding_table: [num_location, embedding_dim] float32
    returns:         [num_samples, embedding_dim] float32
    """
    n_samples = int(user_fea.shape[0])
    num_location, emb_dim = embedding_table.shape
    emb_dim_p = _round_up(emb_dim, 128)  # lane-dense output / row DMAs

    # Indices (column 0) -> SMEM scalar-prefetch operand.
    location_idx = user_fea[:, 0].astype(jnp.int32)

    # Row-tile size: multiple of 8 sublanes; aim for >=2 tiles so both v7x
    # TensorCores get work; never larger than the (padded) batch.
    block_rows = max(8, min(block_rows, _round_up(pl.cdiv(n_samples, 2), 8)))
    n_padded = _round_up(n_samples, block_rows)
    idx_padded = jnp.pad(location_idx, (0, n_padded - n_samples))  # pad rows gather row 0

    table_p = embedding_table
    if emb_dim_p != emb_dim:
        table_p = jnp.pad(embedding_table, ((0, 0), (0, emb_dim_p - emb_dim)))

    itemsize = jnp.dtype(embedding_table.dtype).itemsize
    table_bytes = num_location * emb_dim_p * itemsize
    out_tile_bytes = block_rows * emb_dim_p * itemsize

    vmem_cap = _physical_vmem_bytes()
    vmem_budget = int(vmem_cap * 0.85)  # headroom for Mosaic internal scratch
    # Conservative: assume the table ends up double-buffered even though we
    # request Buffered(1); the output tile is double-buffered by the pipeline.
    resident_need = 2 * table_bytes + 2 * out_tile_bytes + (1 << 20)
    use_resident = (not force_hbm_gather) and (resident_need <= vmem_budget)

    grid = (n_padded // block_rows,)
    out_spec = pl.BlockSpec((block_rows, emb_dim_p), lambda i, idx: (i, 0))
    out_shape = jax.ShapeDtypeStruct((n_padded, emb_dim_p), embedding_table.dtype)

    if use_resident:
        compiler_params = pltpu.CompilerParams(
            dimension_semantics=("parallel",),
            vmem_limit_bytes=int(min(vmem_budget,
                                     max(resident_need, 32 * 1024 * 1024))),
        )

        def call(single_buffer_table):
            spec_kwargs = ({"pipeline_mode": pl.Buffered(1)}
                           if single_buffer_table else {})
            grid_spec = pltpu.PrefetchScalarGridSpec(
                num_scalar_prefetch=1,
                grid=grid,
                in_specs=[pl.BlockSpec((num_location, emb_dim_p),
                                       lambda i, idx: (0, 0), **spec_kwargs)],
                out_specs=out_spec,
            )
            return pl.pallas_call(
                _vmem_row_gather_kernel,
                out_shape=out_shape,
                grid_spec=grid_spec,
                compiler_params=compiler_params,
            )(idx_padded, table_p)

        try:
            # Constant index_map: keep a single VMEM copy of the table.
            out_padded = call(single_buffer_table=True)
        except Exception:
            # If this JAX/Mosaic build rejects single-buffering, fall back to
            # default buffering (the budget above already assumed 2x).
            out_padded = call(single_buffer_table=False)
    else:
        grid_spec = pltpu.PrefetchScalarGridSpec(
            num_scalar_prefetch=1,
            grid=grid,
            in_specs=[pl.BlockSpec(memory_space=pl.ANY)],  # table stays in HBM
            out_specs=out_spec,
            scratch_shapes=[pltpu.SemaphoreType.DMA(())],
        )
        out_padded = pl.pallas_call(
            _hbm_row_gather_kernel,
            out_shape=out_shape,
            grid_spec=grid_spec,
            compiler_params=pltpu.CompilerParams(
                dimension_semantics=("parallel",)),
        )(idx_padded, table_p)

    return out_padded[:n_samples, :emb_dim]


if __name__ == "__main__":
    # Config consistent with the module's __init__ (small synthetic sizes).
    config = {"num_location": 16, "embedding_dim": 32}
    num_samples = 8
    num_user_fea = 4

    key = jax.random.PRNGKey(0)
    k_emb, k_fea = jax.random.split(key)

    # torch.nn.Embedding default init: weight ~ N(0, 1)
    embedding_location = jax.random.normal(
        k_emb, (config["num_location"], config["embedding_dim"]), dtype=jnp.float32)

    # Synthetic user features; column 0 holds the location index.
    user_fea = jax.random.randint(
        k_fea, (num_samples, num_user_fea), 0, config["num_location"], dtype=jnp.int32)

    ref = jnp.take(embedding_location, user_fea[:, 0], axis=0)

    # Path 1: small-table resident-in-VMEM gather (what this config selects).
    out = user_embedding_db_forward(user_fea, embedding_location)
    out = jax.block_until_ready(out)
    assert out.shape == (num_samples, config["embedding_dim"])
    assert out.dtype == jnp.float32
    assert jnp.allclose(out, ref), "resident-table gather mismatch vs reference"

    # Path 2: large-table HBM DMA gather, forced at small shapes to verify it.
    out_hbm = user_embedding_db_forward(user_fea, embedding_location,
                                        force_hbm_gather=True)
    out_hbm = jax.block_until_ready(out_hbm)
    assert jnp.allclose(out_hbm, ref), "HBM DMA gather mismatch vs reference"

    print("KERNEL_OK")
</pallas_src>

<mosaic_0001>
module attributes {stable_mosaic.version = 11 : i64} {
  func.func @_vmem_row_gather_kernel(%arg0: i32, %arg1: memref<8xi32, #tpu.memory_space<smem>>, %arg2: memref<16x128xf32, #tpu.memory_space<vmem>>, %arg3: memref<8x128xf32, #tpu.memory_space<vmem>>) attributes {dimension_semantics = [#tpu.dimension_semantics<parallel>], iteration_bounds = array<i64: 1>, scalar_prefetch = 1 : i64, scratch_operands = 0 : i64, tpu.core_type = #tpu.core_type<tc>, window_params = [{pipeline_mode = #tpu.pipeline_mode<synchronous>, transform_indices = @transform_0, window_bounds = array<i64: 16, 128>}, {transform_indices = @transform_1, window_bounds = array<i64: 8, 128>}]} {
    %c8_i32 = arith.constant 8 : i32
    %0 = arith.muli %arg0, %c8_i32 : i32
    %c0_i32 = arith.constant 0 : i32
    %c8_i32_0 = arith.constant 8 : i32
    %1 = arith.addi %c0_i32, %c8_i32_0 : i32
    %c1_i32 = arith.constant 1 : i32
    scf.for %arg4 = %c0_i32 to %1 step %c1_i32  : i32 {
      %2 = arith.addi %0, %arg4 : i32
      %3 = arith.index_cast %2 : i32 to index
      %4 = memref.load %arg1[%3] : memref<8xi32, #tpu.memory_space<smem>>
      %5 = arith.index_cast %4 : i32 to index
      %c0 = arith.constant 0 : index
      %6 = vector.load %arg2[%5, %c0] : memref<16x128xf32, #tpu.memory_space<vmem>>, vector<1x128xf32>
      %7 = arith.index_cast %arg4 : i32 to index
      %c0_2 = arith.constant 0 : index
      %8 = vector.load %arg3[%7, %c0_2] : memref<8x128xf32, #tpu.memory_space<vmem>>, vector<1x128xf32>
      tpu.vector_store %arg3[%7, %c0_2], %6 {strides = array<i32>} : memref<8x128xf32, #tpu.memory_space<vmem>>, vector<1x128xf32>,
    }
    %c8_i32_1 = arith.constant 8 : i32
    return
  }
  func.func @transform_0(%arg0: i32, %arg1: memref<8xi32, #tpu.memory_space<smem>>) -> (i32, i32) {
    %c0_i32 = arith.constant 0 : i32
    %c0_i32_0 = arith.constant 0 : i32
    %c0_i32_1 = arith.constant 0 : i32
    return %c0_i32, %c0_i32_0 : i32, i32
  }
  func.func @transform_1(%arg0: i32, %arg1: memref<8xi32, #tpu.memory_space<smem>>) -> (i32, i32) {
    %c0_i32 = arith.constant 0 : i32
    %c0_i32_0 = arith.constant 0 : i32
    return %arg0, %c0_i32 : i32, i32
  }
}

module attributes {stable_mosaic.version = 11 : i64} {
  func.func @_vmem_row_gather_kernel(%arg0: i32, %arg1: memref<8xi32, #tpu.memory_space<smem>>, %arg2: memref<16x128xf32, #tpu.memory_space<vmem>>, %arg3: memref<8x128xf32, #tpu.memory_space<vmem>>) attributes {dimension_semantics = [#tpu.dimension_semantics<parallel>], iteration_bounds = array<i64: 1>, scalar_prefetch = 1 : i64, scratch_operands = 0 : i64, tpu.core_type = #tpu.core_type<tc>, window_params = [{pipeline_mode = #tpu.pipeline_mode<synchronous>, transform_indices = @transform_0, window_bounds = array<i64: 16, 128>}, {transform_indices = @transform_1, window_bounds = array<i64: 8, 128>}]} {
    %c8_i32 = arith.constant 8 : i32
    %0 = arith.muli %arg0, %c8_i32 : i32
    %c0_i32 = arith.constant 0 : i32
    %c8_i32_0 = arith.constant 8 : i32
    %1 = arith.addi %c0_i32, %c8_i32_0 : i32
    %c1_i32 = arith.constant 1 : i32
    scf.for %arg4 = %c0_i32 to %1 step %c1_i32  : i32 {
      %2 = arith.addi %0, %arg4 : i32
      %3 = arith.index_cast %2 : i32 to index
      %4 = memref.load %arg1[%3] : memref<8xi32, #tpu.memory_space<smem>>
      %5 = arith.index_cast %4 : i32 to index
      %c0 = arith.constant 0 : index
      %6 = vector.load %arg2[%5, %c0] : memref<16x128xf32, #tpu.memory_space<vmem>>, vector<1x128xf32>
      %7 = arith.index_cast %arg4 : i32 to index
      %c0_2 = arith.constant 0 : index
      %8 = vector.load %arg3[%7, %c0_2] : memref<8x128xf32, #tpu.memory_space<vmem>>, vector<1x128xf32>
      tpu.vector_store %arg3[%7, %c0_2], %6 {strides = array<i32>} : memref<8x128xf32, #tpu.memory_space<vmem>>, vector<1x128xf32>,
    }
    %c8_i32_1 = arith.constant 8 : i32
    return
  }
  func.func @transform_0(%arg0: i32, %arg1: memref<8xi32, #tpu.memory_space<smem>>) -> (i32, i32) {
    %c0_i32 = arith.constant 0 : i32
    %c0_i32_0 = arith.constant 0 : i32
    %c0_i32_1 = arith.constant 0 : i32
    return %c0_i32, %c0_i32_0 : i32, i32
  }
  func.func @transform_1(%arg0: i32, %arg1: memref<8xi32, #tpu.memory_space<smem>>) -> (i32, i32) {
    %c0_i32 = arith.constant 0 : i32
    %c0_i32_0 = arith.constant 0 : i32
    return %arg0, %c0_i32 : i32, i32
  }
}

</mosaic_0001>

<bundles_post_ra>
// kernel: tpu_custom_call.1
= control target key start
LH: loop header
LB: loop body
LE: loop exit
PB: predicated region body
PF: predicated region fallthrough
CT: control target
= control target key end

     0   :  { %s138_s9 = smov [#allocation3]   ;;  %s167_s0 = inlined_call_operand.hbm [shape: s32[8], index: 0, kind: input, shape index: {}]   ;;  %s168_s1 = inlined_call_operand.hbm [shape: f32[16,128], index: 1, kind: input, shape index: {}]   ;;  %s169_s2 = inlined_call_operand.hbm [shape: f32[8,128], index: 2, kind: output, shape index: {}]  }
   0x1   :  { %8 = dma.hbm_to_smem %s167_s0, 16, %s138_s9, [#allocation2] }
   0x2   :  { %128 = dma.done.wait [#allocation2], 16 }
   0x3   :  { %129 = vsyncadd [#allocation2], 4294967280 }
   0x4   :  { %10 = sfence }
   0x5   :  { %11 = vsyncpa [#allocation5], 0 }
   0x6   :  { %12 = vsyncpa [#allocation6], 0  ;;  %s139_s12 = smov [#allocation4]  }
   0x7   :  { %s18_s13 = sshll.u32 %s139_s12, 4  ;;  %s19_s13 = int_to_ptr.vmem [resolvable:$true] %s18_s13 }
   0x8   :  { %s92_s14 = scalar_lea.vmem %s19_s13, 256  ;;  %p97_p1 = scmp.lt.s32.totalorder %s19_s13, %s19_s13 }
   0x9   :  { %p93_p0 = scmp.ne.s32.totalorder %s19_s13, %s92_s14  ;;  %p98_p2 = scmp.lt.s32.totalorder %s92_s14, %s92_s14 }
   0xb   :  { %p99_p3 = por %p98_p2, %p97_p1 }
   0xd   :  { %p100_p4 = pnand %p99_p3, %p93_p0 }
   0xf   :  { %103 = shalt.err (!%p100_p4)
}
  0x10   :  { %s140_s15 = smov 128   ;;  %s141_s16 = smov 8  }
  0x11   :  { %24 = dma.hbm_to_vmem [thread:$0]  %s168_s1, 256, %s19_s13, [#allocation5], %s140_s15, %s140_s15, %s141_s16  }
  0x12   :  { %130 = dma.done.wait [#allocation5], 256  }
  0x13   :  { %131 = vsyncadd [#allocation5], 4294967040  ;;  %s134_s0 = smov 0  }
  0x14 LB: > { %s36_s19 = sld [smem:[#allocation3 + %s136_s0]]  ;;  %s39_s21 = scalar_lea.vmem [#allocation7], %s136_s0  ;;  %s136_s0 = sphi %s134_s0, %s34_s0  }
  0x15   : > { %s34_s0 = sadd.s32 1, %s136_s0  }
  0x16   : > { %p31_p5 = scmp.ge.s32.totalorder %s34_s0, 8  }
  0x17   :  { %s142_s22 = smov (%p31_p5), [#allocation7]  }
  0x18   :  { %33 = sbr.rel (!%p31_p5) target bundleno = 20 (0x14), region = 37  ;;  %s47_s23 = sshll.u32 (%p31_p5), %s142_s22, 4  ;;  %s48_s23 = int_to_ptr.vmem [resolvable:$true] %s47_s23 }
  0x19   :  { %s104_s24 = scalar_lea.vmem (%p31_p5), %s48_s23, 128  ;;  %p109_p7 = scmp.lt.s32.totalorder (%p31_p5), %s48_s23, %s48_s23 }
  0x1a   : > { %s37_s20 = scalar_lea.vmem [#allocation4], %s36_s19  ;;  %p105_p6 = scmp.ne.s32.totalorder (%p31_p5), %s48_s23, %s104_s24 }
  0x1b   : > { %v38_v0 = vld [vmem:[%s37_s20] sm:$0x1]  ;;  %p110_p8 = scmp.lt.s32.totalorder (%p31_p5), %s104_s24, %s104_s24 }
  0x1c   : > { %40 = vst [vmem:[%s39_s21] sm:$0x1] %v38_v0 }
  0x1d   :  { %p111_p9 = por %p110_p8, %p109_p7 }
  0x1f   :  { %p112_p10 = pnand %p111_p9, %p105_p6 }
  0x21   :  { %115 = shalt.err (!%p112_p10)
}
  0x22   :  { %50 = dma.vmem_to_hbm [thread:$0]  %s48_s23, 128, %s169_s2, [#allocation6]  }
  0x23   :  { %132 = dma.done.wait [#allocation6], 128  }
  0x24   :  { %133 = vsyncadd [#allocation6], 4294967168 }
  0x25   :  { %54 = vsyncpa [#allocation5], 1 }
  0x26   :  { %55 = vsyncpa [#allocation6], 1 }

// kernel: tpu_custom_call.1
= control target key start
LH: loop header
LB: loop body
LE: loop exit
PB: predicated region body
PF: predicated region fallthrough
CT: control target
= control target key end

     0   :  { %s138_s9 = smov [#allocation3]   ;;  %s167_s0 = inlined_call_operand.hbm [shape: s32[8], index: 0, kind: input, shape index: {}]   ;;  %s168_s1 = inlined_call_operand.hbm [shape: f32[16,128], index: 1, kind: input, shape index: {}]   ;;  %s169_s2 = inlined_call_operand.hbm [shape: f32[8,128], index: 2, kind: output, shape index: {}]  }
   0x1   :  { %8 = dma.hbm_to_smem %s167_s0, 16, %s138_s9, [#allocation2] }
   0x2   :  { %128 = dma.done.wait [#allocation2], 16 }
   0x3   :  { %129 = vsyncadd [#allocation2], 4294967280 }
   0x4   :  { %10 = sfence }
   0x5   :  { %11 = vsyncpa [#allocation5], 0 }
   0x6   :  { %12 = vsyncpa [#allocation6], 0  ;;  %s139_s12 = smov [#allocation4]  }
   0x7   :  { %s18_s13 = sshll.u32 %s139_s12, 4  ;;  %s19_s13 = int_to_ptr.vmem [resolvable:$true] %s18_s13 }
   0x8   :  { %s92_s14 = scalar_lea.vmem %s19_s13, 256  ;;  %p97_p1 = scmp.lt.s32.totalorder %s19_s13, %s19_s13 }
   0x9   :  { %p93_p0 = scmp.ne.s32.totalorder %s19_s13, %s92_s14  ;;  %p98_p2 = scmp.lt.s32.totalorder %s92_s14, %s92_s14 }
   0xb   :  { %p99_p3 = por %p98_p2, %p97_p1 }
   0xd   :  { %p100_p4 = pnand %p99_p3, %p93_p0 }
   0xf   :  { %103 = shalt.err (!%p100_p4)
}
  0x10   :  { %s140_s15 = smov 128   ;;  %s141_s16 = smov 8  }
  0x11   :  { %24 = dma.hbm_to_vmem [thread:$0]  %s168_s1, 256, %s19_s13, [#allocation5], %s140_s15, %s140_s15, %s141_s16  }
  0x12   :  { %130 = dma.done.wait [#allocation5], 256  }
  0x13   :  { %131 = vsyncadd [#allocation5], 4294967040  ;;  %s134_s0 = smov 0  }
  0x14 LB: > { %s36_s19 = sld [smem:[#allocation3 + %s136_s0]]  ;;  %s39_s21 = scalar_lea.vmem [#allocation7], %s136_s0  ;;  %s136_s0 = sphi %s134_s0, %s34_s0  }
  0x15   : > { %s34_s0 = sadd.s32 1, %s136_s0  }
  0x16   : > { %p31_p5 = scmp.ge.s32.totalorder %s34_s0, 8  }
  0x17   :  { %s142_s22 = smov (%p31_p5), [#allocation7]  }
  0x18   :  { %33 = sbr.rel (!%p31_p5) target bundleno = 20 (0x14), region = 37  ;;  %s47_s23 = sshll.u32 (%p31_p5), %s142_s22, 4  ;;  %s48_s23 = int_to_ptr.vmem [resolvable:$true] %s47_s23 }
  0x19   :  { %s104_s24 = scalar_lea.vmem (%p31_p5), %s48_s23, 128  ;;  %p109_p7 = scmp.lt.s32.totalorder (%p31_p5), %s48_s23, %s48_s23 }
  0x1a   : > { %s37_s20 = scalar_lea.vmem [#allocation4], %s36_s19  ;;  %p105_p6 = scmp.ne.s32.totalorder (%p31_p5), %s48_s23, %s104_s24 }
  0x1b   : > { %v38_v0 = vld [vmem:[%s37_s20] sm:$0x1]  ;;  %p110_p8 = scmp.lt.s32.totalorder (%p31_p5), %s104_s24, %s104_s24 }
  0x1c   : > { %40 = vst [vmem:[%s39_s21] sm:$0x1] %v38_v0 }
  0x1d   :  { %p111_p9 = por %p110_p8, %p109_p7 }
  0x1f   :  { %p112_p10 = pnand %p111_p9, %p105_p6 }
  0x21   :  { %115 = shalt.err (!%p112_p10)
}
  0x22   :  { %50 = dma.vmem_to_hbm [thread:$0]  %s48_s23, 128, %s169_s2, [#allocation6]  }
  0x23   :  { %132 = dma.done.wait [#allocation6], 128  }
  0x24   :  { %133 = vsyncadd [#allocation6], 4294967168 }
  0x25   :  { %54 = vsyncpa [#allocation5], 1 }
  0x26   :  { %55 = vsyncpa [#allocation6], 1 }

</bundles_post_ra>
